<compile_context>
chip_gen: v6e
topology: v6e:2x2x1
jax: 0.10.0
libtpu: 0.0.40
codegen_flags: <defaults>
</compile_context>

<pallas_src>
import functools

import jax
import jax.numpy as jnp
from jax.experimental import pallas as pl
from jax.experimental.pallas import tpu as pltpu

EPS = 1e-5  # nn.InstanceNorm2d default eps


def adain_kernel(scale_ref, beta_ref, x_ref, o_ref, *, inv_hw):
    # scale_ref: (1, TC, 1)  -- (1 + gamma) per channel for this sample
    # beta_ref : (1, TC, 1)
    # x_ref    : (1, TC, HW)
    # o_ref    : (1, TC, HW)
    x = x_ref[0].astype(jnp.float32)                    # (TC, HW)

    # One-pass stats over the spatial axis (block covers the full HW extent,
    # so sums are exact; any zero-padded *channels* just produce junk rows
    # that are sliced away in the wrapper).
    s1 = jnp.sum(x, axis=-1, keepdims=True)             # (TC, 1)
    s2 = jnp.sum(x * x, axis=-1, keepdims=True)         # (TC, 1)
    mean = s1 * inv_hw
    var = jnp.maximum(s2 * inv_hw - mean * mean, 0.0)   # biased var, clamp >= 0
    inv_std = jax.lax.rsqrt(var + EPS)

    out = scale_ref[0] * ((x - mean) * inv_std) + beta_ref[0]
    o_ref[0] = out.astype(o_ref.dtype)


def _round_up(v, m):
    return ((v + m - 1) // m) * m


def adain(x, s, fc_weight, fc_bias, *, vmem_block_budget_bytes=24 * 1024 * 1024):
    """AdaIN forward.

    x: (N, C, H, W)
    s: (N, style_dim)
    fc_weight: (2*C, style_dim)   (PyTorch Linear layout)
    fc_bias:   (2*C,)
    """
    N, C, H, W = x.shape
    HW = H * W

    # --- style projection done once in XLA (negligible flops) ---
    h = (s.astype(jnp.float32) @ fc_weight.astype(jnp.float32).T
         + fc_bias.astype(jnp.float32))                 # (N, 2C)
    scale = (1.0 + h[:, :C]).reshape(N, C, 1)           # (N, C, 1)
    beta = h[:, C:].reshape(N, C, 1)                    # (N, C, 1)

    # --- flatten spatial dims (free reshape; NO padding of HW needed because
    #     the block covers the full spatial extent) ---
    x_flat = x.reshape(N, C, HW)

    # --- choose channel tile TC under the double-buffered VMEM budget ---
    # budget covers: x in + out tiles, double-buffered => 4 * TC * HW * elem
    elem = jnp.dtype(x.dtype).itemsize
    row_bytes = HW * elem
    tc_cap = max(1, vmem_block_budget_bytes // (4 * row_bytes))

    if C <= tc_cap:
        # Full-extent channel block: no padding, no sublane-divisibility rule.
        TC = C
        C_pad = C
    else:
        TC = max(8, (tc_cap // 8) * 8)
        C_pad = _round_up(C, TC)
        # TODO(synk): for extremely large H*W where even an 8-channel tile
        # exceeds VMEM, a two-pass spatial-split (stats grid + normalize grid)
        # would be needed; not implemented here.

    if C_pad != C:
        x_flat = jnp.pad(x_flat, ((0, 0), (0, C_pad - C), (0, 0)))
        scale = jnp.pad(scale, ((0, 0), (0, C_pad - C), (0, 0)))
        beta = jnp.pad(beta, ((0, 0), (0, C_pad - C), (0, 0)))

    grid = (N, C_pad // TC)

    # Explicit VMEM limit: pipeline buffers + f32 compute temporaries + headroom.
    block_bytes = 4 * TC * HW * elem + 4 * TC * 4 * 2
    temp_bytes = 2 * TC * HW * 4
    vmem_limit = max(32 * 1024 * 1024, block_bytes + temp_bytes + (4 << 20))
    vmem_limit = min(vmem_limit, 56 * 1024 * 1024)

    kernel = functools.partial(adain_kernel, inv_hw=1.0 / float(HW))

    out_flat = pl.pallas_call(
        kernel,
        out_shape=jax.ShapeDtypeStruct((N, C_pad, HW), x.dtype),
        grid_spec=pltpu.PrefetchScalarGridSpec(
            num_scalar_prefetch=0,
            grid=grid,
            in_specs=[
                pl.BlockSpec((1, TC, 1), lambda n, c: (n, c, 0)),    # scale
                pl.BlockSpec((1, TC, 1), lambda n, c: (n, c, 0)),    # beta
                pl.BlockSpec((1, TC, HW), lambda n, c: (n, c, 0)),   # x
            ],
            out_specs=pl.BlockSpec((1, TC, HW), lambda n, c: (n, c, 0)),
        ),
        compiler_params=pltpu.CompilerParams(
            dimension_semantics=("parallel", "parallel"),
            vmem_limit_bytes=vmem_limit,
        ),
    )(scale, beta, x_flat)

    if C_pad != C:
        out_flat = out_flat[:, :C, :]
    return out_flat.reshape(N, C, H, W)


def adain_reference(x, s, fc_weight, fc_bias):
    # Plain-JAX reference matching PyTorch semantics.
    N, C, H, W = x.shape
    h = s @ fc_weight.T + fc_bias               # (N, 2C)
    gamma = h[:, :C].reshape(N, C, 1, 1)
    beta = h[:, C:].reshape(N, C, 1, 1)
    mean = x.mean(axis=(2, 3), keepdims=True)
    var = x.var(axis=(2, 3), keepdims=True)     # biased
    x_norm = (x - mean) / jnp.sqrt(var + EPS)
    return (1.0 + gamma) * x_norm + beta


if __name__ == "__main__":
    key = jax.random.PRNGKey(0)
    N, C, H, W = 2, 4, 16, 16
    style_dim = 8

    k1, k2, k3, k4 = jax.random.split(key, 4)
    x = jax.random.normal(k1, (N, C, H, W), dtype=jnp.float32)
    s = jax.random.normal(k2, (N, style_dim), dtype=jnp.float32)

    # Deterministic Linear(style_dim, 2*C) init (PyTorch-style uniform bound).
    bound = 1.0 / (style_dim ** 0.5)
    fc_weight = jax.random.uniform(
        k3, (2 * C, style_dim), minval=-bound, maxval=bound, dtype=jnp.float32)
    fc_bias = jax.random.uniform(
        k4, (2 * C,), minval=-bound, maxval=bound, dtype=jnp.float32)

    out = adain(x, s, fc_weight, fc_bias)
    out = jax.block_until_ready(out)

    ref = adain_reference(x, s, fc_weight, fc_bias)
    assert out.shape == (N, C, H, W)
    assert jnp.allclose(out, ref, atol=1e-4, rtol=1e-4), "mismatch vs reference"

    print("KERNEL_OK")
</pallas_src>

<mosaic_0001>
module attributes {stable_mosaic.version = 11 : i64} {
  func.func @adain_kernel(%arg0: i32, %arg1: i32, %arg2: memref<1x4x1xf32, #tpu.memory_space<vmem>>, %arg3: memref<1x4x1xf32, #tpu.memory_space<vmem>>, %arg4: memref<1x4x256xf32, #tpu.memory_space<vmem>>, %arg5: memref<1x4x256xf32, #tpu.memory_space<vmem>>) attributes {dimension_semantics = [#tpu.dimension_semantics<parallel>, #tpu.dimension_semantics<parallel>], iteration_bounds = array<i64: 2, 1>, scalar_prefetch = 0 : i64, scratch_operands = 0 : i64, tpu.core_type = #tpu.core_type<tc>, window_params = [{transform_indices = @transform_0, window_bounds = array<i64: 1, 4, 1>}, {transform_indices = @transform_1, window_bounds = array<i64: 1, 4, 1>}, {transform_indices = @transform_2, window_bounds = array<i64: 1, 4, 256>}, {transform_indices = @transform_3, window_bounds = array<i64: 1, 4, 256>}]} {
    %c0 = arith.constant 0 : index
    %c0_0 = arith.constant 0 : index
    %c0_1 = arith.constant 0 : index
    %0 = vector.load %arg4[%c0, %c0_0, %c0_1] : memref<1x4x256xf32, #tpu.memory_space<vmem>>, vector<1x4x256xf32>
    %1 = vector.shape_cast %0 : vector<1x4x256xf32> to vector<4x256xf32>
    %cst = arith.constant dense<0.000000e+00> : vector<4xf32>
    %2 = vector.multi_reduction <add>, %1, %cst [1] : vector<4x256xf32> to vector<4xf32>
    %3 = vector.shape_cast %2 : vector<4xf32> to vector<4x1xf32>
    %4 = arith.mulf %1, %1 : vector<4x256xf32>
    %cst_2 = arith.constant dense<0.000000e+00> : vector<4xf32>
    %5 = vector.multi_reduction <add>, %4, %cst_2 [1] : vector<4x256xf32> to vector<4xf32>
    %6 = vector.shape_cast %5 : vector<4xf32> to vector<4x1xf32>
    %cst_3 = arith.constant 3.906250e-03 : f32
    %7 = vector.broadcast %cst_3 : f32 to vector<4x1xf32>
    %8 = arith.mulf %3, %7 : vector<4x1xf32>
    %cst_4 = arith.constant 3.906250e-03 : f32
    %9 = vector.broadcast %cst_4 : f32 to vector<4x1xf32>
    %10 = arith.mulf %6, %9 : vector<4x1xf32>
    %11 = arith.mulf %8, %8 : vector<4x1xf32>
    %12 = arith.subf %10, %11 : vector<4x1xf32>
    %cst_5 = arith.constant 0.000000e+00 : f32
    %13 = vector.broadcast %cst_5 : f32 to vector<4x1xf32>
    %14 = arith.maximumf %12, %13 : vector<4x1xf32>
    %cst_6 = arith.constant 9.99999974E-6 : f32
    %15 = vector.broadcast %cst_6 : f32 to vector<4x1xf32>
    %16 = arith.addf %14, %15 : vector<4x1xf32>
    %17 = math.rsqrt %16 : vector<4x1xf32>
    %c0_7 = arith.constant 0 : index
    %c0_8 = arith.constant 0 : index
    %c0_9 = arith.constant 0 : index
    %18 = vector.load %arg2[%c0_7, %c0_8, %c0_9] : memref<1x4x1xf32, #tpu.memory_space<vmem>>, vector<1x4x1xf32>
    %19 = vector.shape_cast %18 : vector<1x4x1xf32> to vector<4x1xf32>
    %20 = vector.broadcast %8 : vector<4x1xf32> to vector<4x256xf32>
    %21 = arith.subf %1, %20 : vector<4x256xf32>
    %22 = vector.broadcast %17 : vector<4x1xf32> to vector<4x256xf32>
    %23 = arith.mulf %21, %22 : vector<4x256xf32>
    %24 = vector.broadcast %19 : vector<4x1xf32> to vector<4x256xf32>
    %25 = arith.mulf %24, %23 : vector<4x256xf32>
    %c0_10 = arith.constant 0 : index
    %c0_11 = arith.constant 0 : index
    %c0_12 = arith.constant 0 : index
    %26 = vector.load %arg3[%c0_10, %c0_11, %c0_12] : memref<1x4x1xf32, #tpu.memory_space<vmem>>, vector<1x4x1xf32>
    %27 = vector.shape_cast %26 : vector<1x4x1xf32> to vector<4x1xf32>
    %28 = vector.broadcast %27 : vector<4x1xf32> to vector<4x256xf32>
    %29 = arith.addf %25, %28 : vector<4x256xf32>
    %c0_13 = arith.constant 0 : index
    %c0_14 = arith.constant 0 : index
    %c0_15 = arith.constant 0 : index
    %30 = vector.load %arg5[%c0_13, %c0_14, %c0_15] : memref<1x4x256xf32, #tpu.memory_space<vmem>>, vector<1x4x256xf32>
    %31 = vector.shape_cast %30 : vector<1x4x256xf32> to vector<4x256xf32>
    %32 = vector.shape_cast %29 : vector<4x256xf32> to vector<1x4x256xf32>
    tpu.vector_store %arg5[%c0_13, %c0_14, %c0_15], %32 {strides = array<i32>} : memref<1x4x256xf32, #tpu.memory_space<vmem>>, vector<1x4x256xf32>,
    return
  }
  func.func @transform_0(%arg0: i32, %arg1: i32) -> (i32, i32, i32) {
    %c0_i32 = arith.constant 0 : i32
    %c0_i32_0 = arith.constant 0 : i32
    return %arg0, %arg1, %c0_i32 : i32, i32, i32
  }
  func.func @transform_1(%arg0: i32, %arg1: i32) -> (i32, i32, i32) {
    %c0_i32 = arith.constant 0 : i32
    %c0_i32_0 = arith.constant 0 : i32
    return %arg0, %arg1, %c0_i32 : i32, i32, i32
  }
  func.func @transform_2(%arg0: i32, %arg1: i32) -> (i32, i32, i32) {
    %c0_i32 = arith.constant 0 : i32
    %c0_i32_0 = arith.constant 0 : i32
    return %arg0, %arg1, %c0_i32 : i32, i32, i32
  }
  func.func @transform_3(%arg0: i32, %arg1: i32) -> (i32, i32, i32) {
    %c0_i32 = arith.constant 0 : i32
    %c0_i32_0 = arith.constant 0 : i32
    return %arg0, %arg1, %c0_i32 : i32, i32, i32
  }
}

</mosaic_0001>

<bundles_post_ra>
// kernel: tpu_custom_call.1
= control target key start
LH: loop header
LB: loop body
LE: loop exit
PB: predicated region body
PF: predicated region fallthrough
CT: control target
= control target key end

     0   :  { %8 = vsyncpa [#allocation3], 0  ;;  %s738_s0 = inlined_call_operand.vmem [shape: f32[2,4,1], index: 0, kind: input, shape index: {}]   ;;  %s739_s1 = inlined_call_operand.vmem [shape: f32[2,4,1], index: 1, kind: input, shape index: {}]   ;;  %s740_s2 = inlined_call_operand.vmem [shape: f32[2,4,256], index: 2, kind: input, shape index: {}]   ;;  %s741_s3 = inlined_call_operand.hbm [shape: f32[2,4,256], index: 3, kind: output, shape index: {}]  }
   0x1   :  { %10 = vsyncpa [#allocation3 + $0x1], 0  ;;  %s629_s12 = smov 0   ;;  %s631_s13 = smov 0  }
   0x2   :  { %s633_s14 = smov 0   ;;  %s635_s15 = smov 0  }
   0x3   :  { %s637_s16 = smov 0   ;;  %s639_s17 = smov 0  }
   0x4 LB: > { %s449_s18 = sadd.s32 4294967295, %s604_s17   ;;  %s450_s19 = sadd.s32 4294967294, %s604_s17   ;;  %s604_s17 = sphi %s639_s17, %s16_s17   ;;  %s600_s16 = sphi %s637_s16, %s748_s16   ;;  %s596_s15 = sphi %s635_s15, %s747_s15   ;;  %s592_s14 = sphi %s633_s14, %s746_s14   ;;  %s588_s13 = sphi %s631_s13, %s745_s13   ;;  %s584_s12 = sphi %s629_s12, %s744_s12  }
   0x5   : > { %s28_s20 = sadd.s32 1, %s600_s16  ;;  %s121_s21 = sadd.s32 1, %s592_s14 }
   0x6   : > { %p30_p0 = scmp.ge.s32.totalorder %s28_s20, 2  ;;  %p131_p1 = scmp.ne.s32.totalorder %s592_s14, %s588_s13 }
   0x7   : > { %p132_p2 = scmp.eq.s32.totalorder %s449_s18, 1  ;;  %p137_p3 = scmp.ne.s32.totalorder %s588_s13, %s584_s12 }
   0x8   : > { %s750_s20 = smov (%p30_p0, %s28_s20), 0  ;;  %p138_p5 = scmp.eq.s32.totalorder %s450_s19, 1 }
   0x9   : > { %p669_p4 = por %p132_p2, %p131_p1  ;;  %s116_s23 = ssub.s32 %s600_s16, %s750_s20 }
   0xa   : > { %p453_p6 = scmp.ge.s32.totalorder %s604_s17, 1  ;;  %p119_p7 = scmp.eq.s32.totalorder %s116_s23, 0 }
   0xb   : > { %p676_p8 = por %p138_p5, %p137_p3  ;;  %p188_p9 = scmp.lt.s32.totalorder %s604_s17, 3 }
   0xc   : > { %s682_s25 = scalar_select %p119_p7, %s592_s14, %s121_s21  }
   0xd   : > { %p189_p10 = pnand %p453_p6, %p188_p9 }
   0xe   : > { %p230_p11 = scmp.lt.s32.totalorder (!%p189_p10), %s596_s15, 1  ;;  %s227_s11 = sand.u32 (!%p189_p10), 1, %s588_s13  }
   0xf   : > { %192 = sbr.rel (%p189_p10) target bundleno = 219 (0xdb), region = 32  ;;  %s454_s18 = sshll.u32 (!%p189_p10), %s227_s11, 3 }
  0x10   : > { %s465_s19 = sshll.u32 (!%p189_p10), %s596_s15, 7  ;;  %s229_s21 = scalar_lea.vmem (!%p189_p10), [#allocation2], %s454_s18 }
  0x11   : > { %s340_s23 = sshll.u32 (!%p189_p10), %s229_s21, 4  ;;  %s324_s29 = scalar_lea.sflag (!%p189_p10), [#allocation3], %s227_s11  ;;  %s341_s23 = int_to_ptr.vmem [resolvable:$true] %s340_s23 }
  0x12   : > { %s528_s30 = scalar_lea.vmem (!%p189_p10), %s341_s23, 128 }
  0x13   : > { %p529_p12 = scmp.ne.s32.totalorder (!%p189_p10), %s341_s23, %s528_s30 }
  0x14   : > { %v606_v0 = vmov 0   ;;  %s231_s26 = scalar_select %p230_p11, %s596_s15, 1  ;;  %vm257_vm0 = vcmask 1043456   ;;  %v607_v20 = vmov 839922192   ;;  %v284_v22 = vlaneseq }
  0x15   : > { %523 = vset.pattern.permute.xlu1 %v606_v0  ;;  %524 = vset.pattern.permute.xlu0 %v606_v0  ;;  %v282_v21 = vunpack.c.l.s4 %v607_v20  ;;  %p530_p13 = pnand %p529_p12, %p669_p4 }
  0x16   : > { %s464_s27 = sshll.u32 %s231_s26, 3  ;;  %s455_s28 = sshll.u32 %s231_s26, 2  ;;  %v285_v25 = vshrl.u32 %v284_v22, 7 }
  0x17   : > { %s252_s4 = scalar_lea.vmem %s740_s2, %s464_s27  ;;  %s236_s7 = scalar_lea.vmem %s738_s0, %s455_s28  ;;  %v283_v24 = vunpack.c.0.s8 %v282_v21 }
  0x18   : > { %v253_v1 = vld [vmem:[%s252_s4] sm:$0xff]  ;;  %s243_s10 = scalar_lea.vmem %s739_s1, %s455_s28  ;;  %s338_s28 = scalar_lea.hbm %s741_s3, %s465_s19 }
  0x19   : > { %v279_v2 = vld [vmem:[%s236_s7] sm:$0xf]  ;;  %v255_v3 = vcombine.high %v253_v1, %v253_v1  ;;  %v258_v4 = vsel %vm257_vm0, %v253_v1, 0.0  ;;  %v263_v5 = vmul.f32 %v253_v1, %v253_v1  ;;  %v286_v26 = vsub.s32 %v283_v24, %v285_v25  ;;  %p531_p0 = pneg %p530_p13  ;;  %s608_s4 = smov [#allocation2]  }
  0x1a   : > { %302 = vperm.xlu1 %523, %v279_v2   ;;  %v310_v6 = vld [vmem:[%s243_s10] sm:$0xf]  ;;  %s532_s5 = sshll.u32 %s608_s4, 4  ;;  %s533_s5 = int_to_ptr.vmem [resolvable:$false] %s532_s5 }
  0x1b   : > { %v259_v7 = vsel %vm257_vm0, %v255_v3, 0.0  ;;  %v265_v8 = vcombine.high %v263_v5, %v263_v5  ;;  %v267_v9 = vsel %vm257_vm0, %v263_v5, 0.0  ;;  %s534_s15 = scalar_lea.vmem %s533_s5, 256  ;;  %p535_p1 = scmp.lt.s32.totalorder %s341_s23, %s533_s5 }
  0x1c   : > { %v260_v10 = vadd.f32 %v259_v7, %v258_v4  ;;  %p536_p2 = scmp.lt.s32.totalorder %s534_s15, %s528_s30 }
  0x1d   : > { %v268_v11 = vsel %vm257_vm0, %v265_v8, 0.0 }
  0x1e   : > { %313 = vperm.xlu1 %523, %v310_v6   ;;  %261 = vadd.xlane.f32.xlu0 %v260_v10  ;;  %v269_v12 = vadd.f32 %v268_v11, %v267_v9  ;;  %p537_p3 = por %p536_p2, %p535_p1 }
  0x20   : > { %p538_p5 = pnand %p537_p3, %p531_p0 }
  0x22   : > { %270 = vadd.xlane.f32.xlu0 %v269_v12 }
  0x95   : > { %v303_v31 = vpop.permute.xlu1 %302 }
  0x99   : > { %v314_v36 = vpop.permute.xlu1 %313 }
  0xa7   : > { %v262_v13 = vpop.xlane.xlu0 %261 }
  0xa8   : > { %v272_v14 = vmul.f32 0.00390625, %v262_v13 }
  0xaa   : > { %v274_v16 = vmul.f32 %v272_v14, %v272_v14  ;;  %v287_v27 = vrot.slane %v272_v14, %v286_v26 }
  0xab   : > { %v271_v15 = vpop.xlane.xlu0 %270 }
  0xac   : > { %v273_v17 = vmul.f32 0.00390625, %v271_v15  ;;  %v289_v29 = vsub.f32 %v253_v1, %v287_v27 }
  0xae   : > { %v275_v18 = vsub.f32 %v273_v17, %v274_v16 }
  0xb0   : > { %v276_v19 = vmax.f32 %v275_v18, 0.0 }
  0xb2   : > { %v277_v23 = vadd.f32 1e-05, %v276_v19 }
  0xb4   : > { %526 = vrsqrt.f32 %v277_v23 }
  0xc1   : > { %v527_v28 = vpop.eup %526 }
  0xc2   : > { %v297_v30 = vrot.slane %v527_v28, %v286_v26 }
  0xc4   : > { %v299_v32 = vmul.f32 %v297_v30, %v289_v29 }
  0xc6   : > { %v306_v33 = vcombine.high %v299_v32, %v299_v32  ;;  %v308_v34 = vmul.f32 %v303_v31, %v299_v32 }
  0xc8   : > { %v309_v35 = vmul.f32 %v306_v33, %v303_v31  ;;  %v316_v37 = vadd.f32 %v314_v36, %v308_v34 }
  0xca   : > { %v317_v38 = vadd.f32 %v314_v36, %v309_v35 }
  0xcc   : > { %v320_v39 = vcombine.low %v316_v37, %v317_v38 }
  0xce   : > { %322 = vst [vmem:[%s229_s21] sm:$0xff] %v320_v39 }
  0xcf   : > { %541 = shalt.err (!%p538_p5)
}
  0xd0   : > { %s542_s6 = scalar_lea.hbm %s338_s28, 128  ;;  %s546_s9 = scalar_lea.hbm %s741_s3, 256 }
  0xd1   : > { %p543_p6 = scmp.ne.s32.totalorder %s338_s28, %s542_s6  ;;  %p547_p10 = scmp.lt.s32.totalorder %s338_s28, %s741_s3 }
  0xd2   : > { %p548_p11 = scmp.lt.s32.totalorder %s546_s9, %s542_s6 }
  0xd3   : > { %p544_p7 = pnand %p543_p6, %p669_p4 }
  0xd4   : > { %p549_p12 = por %p548_p11, %p547_p10 }
  0xd5   : > { %p545_p9 = pneg %p544_p7 }
  0xd7   : > { %p550_p13 = pnand %p549_p12, %p545_p9 }
  0xd9   : > { %553 = shalt.err (!%p550_p13)
}
  0xda   : > { %466 = dma.vmem_to_hbm [thread:$0]  (%p669_p4), %s341_s23, 128, %s338_s28, %s324_s29  }
  0xdb PF: > { %p472_p0 = scmp.ge.s32.totalorder %s604_s17, 2  ;;  %s352_s18 = sand.u32 1, %s584_s12  }
  0xdc   : > { %s353_s19 = scalar_lea.sflag [#allocation3], %s352_s18 }
  0xdd   : > { %p469_p1 = pnand %p472_p0, %p676_p8 }
  0xdf   : > { %p470_p2 = pneg %p469_p1 }
  0xe1   : > { %579 = dma.done.wait (%p470_p2), %s353_s19, 128  }
  0xe2   : > { %581 = vsyncadd (%p470_p2), %s353_s19, 4294967168  ;;  %s16_s17 = sadd.s32 1, %s604_s17   ;;  %s744_s12 = smov %s588_s13 }
  0xe3   : > { %p13_p3 = scmp.ge.s32.totalorder %s16_s17, 4   ;;  %s745_s13 = smov %s592_s14 }
  0xe4   : > { %s746_s14 = smov %s682_s25  ;;  %s747_s15 = smov %s600_s16 }
  0xe5   : > { %s748_s16 = smov %s750_s20  ;;  %15 = sbr.rel (!%p13_p3) target bundleno = 4 (0x4), region = 73 }
  0xea   :  { %358 = vsyncpa [#allocation3], 1 }
  0xeb   :  { %360 = vsyncpa [#allocation3 + $0x1], 1 }

</bundles_post_ra>
